<compile_context>
chip_gen: v7x
topology: tpu7x:2x2x1
jax: 0.10.0
libtpu: 0.0.40
codegen_flags: <defaults>
</compile_context>

<pallas_src>
import numpy as np
import jax
import jax.numpy as jnp
from jax.experimental import pallas as pl
from jax.experimental.pallas import tpu as pltpu

B = 2            # batch
L_IN = 28        # sequence length (forced by the 384 flatten)
C1, C2 = 64, 32
K = 3
L1 = L_IN - K + 1      # 26 after conv1
L2 = L1 - K + 1        # 24 after conv2
LP = L2 // 2           # 12 after MaxPool1d(2)   -> LP * C2 = 384
KQ = 6                 # input taps feeding one quad row (4 conv1 positions)
XQ_COLS = 8            # 6 taps + 1 ones (folded bias) + 1 zero pad

# constant-slab row offsets (even + 8-aligned block starts, bf16-pack friendly)
ROW_W1Q = 0            # rows 0..7   : w1q (8, 256)
ROW_B2P = 8            # row 8       : conv2 pair bias in lanes 0..63
ROW_BFC = 16           # row 16      : fc bias in lane 0
ROW_SEL = 24           # rows 24..25 : 0/1 per-sample selection (B, B*LP)
ROW_WFC = 32           # rows 32..55 : fc weights in pair layout (B*LP, C2)
SLAB_ROWS = 56


# ----------------------------------------------------------------------------
# Kernel (single shot, no grid; everything lives in vregs between the matmuls)
# ----------------------------------------------------------------------------
def net_kernel(xq_ref, w2p_ref, slab_ref, o_ref):
    # conv1 + ReLU in quad layout (one bf16 MXU matmul).  Row b*LP + p of the
    # result holds relu(conv1(x))[b, c, 2p + u] at lane u*C1 + c, u = 0..3,
    # i.e. it is already the conv2 im2col -- no slices/concats/rolls needed.
    w1q = slab_ref[ROW_W1Q:ROW_W1Q + XQ_COLS, :]                    # (8, 256) bf16
    cols = jnp.dot(xq_ref[...], w1q, preferred_element_type=jnp.float32)
    cols = jnp.maximum(cols, 0.0).astype(jnp.bfloat16)              # (24, 256)

    # conv2 + ReLU: single K=256 bf16 MXU matmul in pair layout.
    #   h2[b*LP + p, r*C2 + c] = relu(conv2(...))[b, c, 2p + r],  r in {0, 1}
    b2p = slab_ref[ROW_B2P:ROW_B2P + 1, 0:2 * C2]                   # (1, 64) bf16
    h2 = jnp.dot(cols, w2p_ref[...], preferred_element_type=jnp.float32)
    h2 = jnp.maximum(h2 + b2p, 0.0)                                 # (24, 64) f32

    # MaxPool1d(2): the two pool candidates sit in adjacent 32-lane blocks.
    pooled = jnp.maximum(h2[:, :C2], h2[:, C2:])                    # (24, 32) f32

    # fc1 + sigmoid: elementwise weight (NCL-flatten order), per-sample 0/1
    # selection matmul, one lane reduce, single vectorized (B, 1) store.
    wfc = slab_ref[ROW_WFC:ROW_WFC + B * LP, 0:C2]                  # (24, 32) bf16
    sel = slab_ref[ROW_SEL:ROW_SEL + B, 0:B * LP]                   # (2, 24) bf16
    weighted = (pooled * wfc).astype(jnp.bfloat16)                  # (24, 32)
    per_ch = jnp.dot(sel, weighted, preferred_element_type=jnp.float32)   # (B, 32)
    bfc = slab_ref[ROW_BFC:ROW_BFC + 1, 0:1]                        # (1, 1) bf16
    logits = jnp.sum(per_ch, axis=1, keepdims=True) + bfc           # (B, 1) f32
    o_ref[...] = jax.nn.sigmoid(logits)


# ----------------------------------------------------------------------------
# Wrapper-side packing (pure layout plumbing, done once / fused by XLA)
# ----------------------------------------------------------------------------
def pack_params(w1_t, b1_t, w2_t, b2_t, wfc_t, bfc_t):
    """PyTorch-shaped params -> (w2p bf16, constant slab bf16)."""
    # conv1 quad weights: w1q[s, u*C1 + c] = w1_t[c, 0, s - u] if 0 <= s-u < K,
    # row 6 = bias (pairs with the ones column of xq), row 7 = 0.
    w1q = jnp.zeros((XQ_COLS, 4 * C1), jnp.float32)
    for u in range(4):
        for k in range(K):
            w1q = w1q.at[u + k, u * C1:(u + 1) * C1].set(w1_t[:, 0, k])
    w1q = w1q.at[6, :].set(jnp.tile(b1_t, 4))

    # conv2 pair weights: w2p[u*C1 + ci, r*C2 + co] = w2_t[co, ci, u - r] (else 0)
    w2p = jnp.zeros((4 * C1, 2 * C2), jnp.float32)
    for r in range(2):
        for k in range(K):
            u = r + k
            w2p = w2p.at[u * C1:(u + 1) * C1,
                         r * C2:(r + 1) * C2].set(w2_t[:, :, k].T)

    b2p = jnp.concatenate([b2_t, b2_t])                              # (2*C2,)

    # fc weights in (pool position, channel) order (torch NCL .view(-1, 384)),
    # tiled once per sample so the in-kernel multiply is plain elementwise.
    wfc_k = jnp.transpose(wfc_t.reshape(C2, LP), (1, 0))             # (LP, C2)
    wfc_tiled = jnp.tile(wfc_k, (B, 1))                              # (B*LP, C2)

    # 0/1 per-sample row-selection matrix for the final reduction.
    sel = jnp.kron(jnp.eye(B, dtype=jnp.float32),
                   jnp.ones((1, LP), jnp.float32))                   # (B, B*LP)

    # Single lane-padded (56, 256) constant slab -> one DMA descriptor.
    slab = jnp.zeros((SLAB_ROWS, 4 * C1), jnp.float32)
    slab = slab.at[ROW_W1Q:ROW_W1Q + XQ_COLS, :].set(w1q)
    slab = slab.at[ROW_B2P, 0:2 * C2].set(b2p)
    slab = slab.at[ROW_BFC, 0].set(bfc_t[0])
    slab = slab.at[ROW_SEL:ROW_SEL + B, 0:B * LP].set(sel)
    slab = slab.at[ROW_WFC:ROW_WFC + B * LP, 0:C2].set(wfc_tiled)
    return w2p.astype(jnp.bfloat16), slab.astype(jnp.bfloat16)


def build_xq(x):
    """conv1 quad-layout im2col: xq[b*LP + p, s] = x[b, 2p + s, 0] for s=0..5,
    column 6 = 1 (folded conv1 bias), column 7 = 0 (pad to 8 lanes)."""
    xs = x[..., 0]                                                   # (B, L_IN)
    taps = [xs[:, s:s + 2 * LP:2] for s in range(KQ)]                # each (B, LP)
    xq = jnp.stack(taps, axis=-1).reshape(B * LP, KQ)                # (B*LP, 6)
    pad = jnp.concatenate([jnp.ones((B * LP, 1), xq.dtype),
                           jnp.zeros((B * LP, 1), xq.dtype)], axis=1)
    return jnp.concatenate([xq, pad], axis=1).astype(jnp.bfloat16)   # (B*LP, 8)


@jax.jit
def net_forward(x, w2p, slab):
    xq = build_xq(x)
    flops = 2 * (B * LP * XQ_COLS * 4 * C1        # conv1 quad matmul
                 + B * LP * 4 * C1 * 2 * C2       # conv2 matmul (K = 256)
                 + B * B * LP * C2)               # selection matmul
    bytes_accessed = 2 * (xq.size + w2p.size + slab.size) + 4 * B
    return pl.pallas_call(
        net_kernel,
        out_shape=jax.ShapeDtypeStruct((B, 1), jnp.float32),
        in_specs=[pl.BlockSpec(memory_space=pltpu.MemorySpace.VMEM)] * 3,
        out_specs=pl.BlockSpec(memory_space=pltpu.MemorySpace.VMEM),
        cost_estimate=pl.CostEstimate(flops=flops, transcendentals=4 * B,
                                      bytes_accessed=bytes_accessed),
    )(xq, w2p, slab)


# ----------------------------------------------------------------------------
# Pure-JAX f32 reference (emulates the PyTorch forward, NCL conventions)
# ----------------------------------------------------------------------------
def reference_forward(x, w1_t, b1_t, w2_t, b2_t, wfc_t, bfc_t):
    xc = jnp.transpose(x, (0, 2, 1))                                  # (B, 1, L)
    dn = ('NCH', 'OIH', 'NCH')
    h1 = jax.lax.conv_general_dilated(xc, w1_t, (1,), 'VALID',
                                      dimension_numbers=dn)
    h1 = jax.nn.relu(h1 + b1_t[None, :, None])                        # (B, 64, 26)
    h2 = jax.lax.conv_general_dilated(h1, w2_t, (1,), 'VALID',
                                      dimension_numbers=dn)
    h2 = jax.nn.relu(h2 + b2_t[None, :, None])                        # (B, 32, 24)
    pooled = jnp.max(h2.reshape(h2.shape[0], C2, LP, 2), axis=-1)     # (B, 32, 12)
    flat = pooled.reshape(pooled.shape[0], C2 * LP)                   # NCL flatten
    return jax.nn.sigmoid(flat @ wfc_t.T + bfc_t[None, :])            # (B, 1)


if __name__ == "__main__":
    key = jax.random.PRNGKey(0)
    kx, k1, k2, k3, k4, k5, k6 = jax.random.split(key, 7)

    # input: (batch, seq_len, features=1), same as the torch module expects
    x = jax.random.normal(kx, (B, L_IN, 1), dtype=jnp.float32)

    # deterministic parameters in native PyTorch shapes
    w1_t = jax.random.uniform(k1, (C1, 1, K), jnp.float32, -0.5, 0.5)      # Conv1d(1, 64, 3)
    b1_t = jax.random.uniform(k2, (C1,), jnp.float32, -0.5, 0.5)
    w2_t = jax.random.uniform(k3, (C2, C1, K), jnp.float32, -0.1, 0.1)     # Conv1d(64, 32, 3)
    b2_t = jax.random.uniform(k4, (C2,), jnp.float32, -0.1, 0.1)
    wfc_t = jax.random.uniform(k5, (1, LP * C2), jnp.float32, -0.05, 0.05) # Linear(384, 1)
    bfc_t = jax.random.uniform(k6, (1,), jnp.float32, -0.05, 0.05)

    w2p, slab = pack_params(w1_t, b1_t, w2_t, b2_t, wfc_t, bfc_t)
    out = jax.block_until_ready(net_forward(x, w2p, slab))

    ref = reference_forward(x, w1_t, b1_t, w2_t, b2_t, wfc_t, bfc_t)
    # bf16 MXU inputs (per perf review) -> expect ~1e-2 relative vs the f32 ref.
    np.testing.assert_allclose(np.asarray(out), np.asarray(ref), rtol=2e-2, atol=2e-2)

    print("KERNEL_OK")
</pallas_src>

<mosaic_0001>
module attributes {stable_mosaic.version = 11 : i64} {
  func.func @net_kernel(%arg0: memref<24x8xbf16, #tpu.memory_space<vmem>>, %arg1: memref<256x64xbf16, #tpu.memory_space<vmem>>, %arg2: memref<56x256xbf16, #tpu.memory_space<vmem>>, %arg3: memref<2x1xf32, #tpu.memory_space<vmem>>) attributes {dimension_semantics = [], scalar_prefetch = 0 : i64, scratch_operands = 0 : i64, tpu.core_type = #tpu.core_type<tc>} {
    %c0 = arith.constant 0 : index
    %c0_0 = arith.constant 0 : index
    %0 = vector.load %arg2[%c0, %c0_0] : memref<56x256xbf16, #tpu.memory_space<vmem>>, vector<8x256xbf16>
    %c0_1 = arith.constant 0 : index
    %c0_2 = arith.constant 0 : index
    %1 = vector.load %arg0[%c0_1, %c0_2] : memref<24x8xbf16, #tpu.memory_space<vmem>>, vector<24x8xbf16>
    %cst = arith.constant dense<0.000000e+00> : vector<24x256xf32>
    %2 = tpu.matmul %1, %0, %cst {dimension_numbers = #tpu.dot_dimension_numbers<[1], [0], [0], [1], [0, 0, 1, 1], [], []>} : vector<24x8xbf16>, vector<8x256xbf16>, vector<24x256xf32> -> vector<24x256xf32>
    %cst_3 = arith.constant 0.000000e+00 : f32
    %3 = vector.broadcast %cst_3 : f32 to vector<24x256xf32>
    %4 = arith.maximumf %2, %3 : vector<24x256xf32>
    %5 = arith.truncf %4 : vector<24x256xf32> to vector<24x256xbf16>
    %c8 = arith.constant 8 : index
    %c0_4 = arith.constant 0 : index
    %6 = vector.load %arg2[%c8, %c0_4] : memref<56x256xbf16, #tpu.memory_space<vmem>>, vector<1x64xbf16>
    %c0_5 = arith.constant 0 : index
    %c0_6 = arith.constant 0 : index
    %7 = vector.load %arg1[%c0_5, %c0_6] : memref<256x64xbf16, #tpu.memory_space<vmem>>, vector<256x64xbf16>
    %cst_7 = arith.constant dense<0.000000e+00> : vector<24x64xf32>
    %8 = tpu.matmul %5, %7, %cst_7 {dimension_numbers = #tpu.dot_dimension_numbers<[1], [0], [0], [1], [0, 0, 1, 1], [], []>} : vector<24x256xbf16>, vector<256x64xbf16>, vector<24x64xf32> -> vector<24x64xf32>
    %9 = arith.extf %6 : vector<1x64xbf16> to vector<1x64xf32>
    %10 = vector.broadcast %9 : vector<1x64xf32> to vector<24x64xf32>
    %11 = arith.addf %8, %10 : vector<24x64xf32>
    %cst_8 = arith.constant 0.000000e+00 : f32
    %12 = vector.broadcast %cst_8 : f32 to vector<24x64xf32>
    %13 = arith.maximumf %11, %12 : vector<24x64xf32>
    %14 = vector.extract_strided_slice %13 {offsets = [0, 0], sizes = [24, 32], strides = [1, 1]} : vector<24x64xf32> to vector<24x32xf32>
    %15 = vector.extract_strided_slice %13 {offsets = [0, 32], sizes = [24, 32], strides = [1, 1]} : vector<24x64xf32> to vector<24x32xf32>
    %16 = arith.maximumf %14, %15 : vector<24x32xf32>
    %c32 = arith.constant 32 : index
    %c0_9 = arith.constant 0 : index
    %17 = vector.load %arg2[%c32, %c0_9] : memref<56x256xbf16, #tpu.memory_space<vmem>>, vector<24x32xbf16>
    %c24 = arith.constant 24 : index
    %c0_10 = arith.constant 0 : index
    %18 = vector.load %arg2[%c24, %c0_10] : memref<56x256xbf16, #tpu.memory_space<vmem>>, vector<2x24xbf16>
    %19 = arith.extf %17 : vector<24x32xbf16> to vector<24x32xf32>
    %20 = arith.mulf %16, %19 : vector<24x32xf32>
    %21 = arith.truncf %20 : vector<24x32xf32> to vector<24x32xbf16>
    %cst_11 = arith.constant dense<0.000000e+00> : vector<2x32xf32>
    %22 = tpu.matmul %18, %21, %cst_11 {dimension_numbers = #tpu.dot_dimension_numbers<[1], [0], [0], [1], [0, 0, 1, 1], [], []>} : vector<2x24xbf16>, vector<24x32xbf16>, vector<2x32xf32> -> vector<2x32xf32>
    %c16 = arith.constant 16 : index
    %c0_12 = arith.constant 0 : index
    %23 = vector.load %arg2[%c16, %c0_12] : memref<56x256xbf16, #tpu.memory_space<vmem>>, vector<1x1xbf16>
    %cst_13 = arith.constant dense<0.000000e+00> : vector<2xf32>
    %24 = vector.multi_reduction <add>, %22, %cst_13 [1] : vector<2x32xf32> to vector<2xf32>
    %25 = vector.shape_cast %24 : vector<2xf32> to vector<2x1xf32>
    %26 = arith.extf %23 : vector<1x1xbf16> to vector<1x1xf32>
    %27 = vector.broadcast %26 : vector<1x1xf32> to vector<2x1xf32>
    %28 = arith.addf %25, %27 : vector<2x1xf32>
    %29 = arith.negf %28 : vector<2x1xf32>
    %30 = math.exp %29 : vector<2x1xf32>
    %cst_14 = arith.constant 1.000000e+00 : f32
    %31 = vector.broadcast %cst_14 : f32 to vector<2x1xf32>
    %32 = arith.addf %31, %30 : vector<2x1xf32>
    %33 = arith.divf %31, %32 : vector<2x1xf32>
    %c0_15 = arith.constant 0 : index
    %c0_16 = arith.constant 0 : index
    %34 = vector.load %arg3[%c0_15, %c0_16] : memref<2x1xf32, #tpu.memory_space<vmem>>, vector<2x1xf32>
    tpu.vector_store %arg3[%c0_15, %c0_16], %33 {strides = array<i32>} : memref<2x1xf32, #tpu.memory_space<vmem>>, vector<2x1xf32>,
    return
  }
}

</mosaic_0001>

<bundles_post_ra>
// kernel: net_forward.1
= control target key start
LH: loop header
LB: loop body
LE: loop exit
PB: predicated region body
PF: predicated region fallthrough
CT: control target
= control target key end

     0   :  { %vm39_vm0 = vcmask 1043456   ;;  %v481_v1 = vmov 0   ;;  %vm32_vm1 = vcmask 64512   ;;  %v141_v41 = vlaneseq  ;;  %s483_s23 = smov 96   ;;  %s588_s2 = inlined_call_operand.vmem [shape: bf16[56,256], index: 2, kind: input, shape index: {}]   ;;  %s589_s0 = inlined_call_operand.vmem [shape: bf16[24,8], index: 0, kind: input, shape index: {}]   ;;  %s590_s1 = inlined_call_operand.vmem [shape: bf16[256,64], index: 1, kind: input, shape index: {}]   ;;  %s591_s3 = inlined_call_operand.vmem [shape: f32[2,1], index: 3, kind: output, shape index: {}]  }
   0x1   :  { %v15_v0 = vld [vmem:[%s588_s2] sm:$0xff]  ;;  %78 = vmatprep.mubr.bf16.mxu0 %v481_v1  ;;  %v463_v8 = vld [vmem:[%s590_s1 + $0x48] sm:$0xff]   ;;  %v465_v10 = vld [vmem:[%s590_s1 + $0x50] sm:$0xff]   ;;  %v482_v54 = vmov 0.0   ;;  %vm484_vm2 = vmmov 0   ;;  %vm319_vm3 = vcmask 195584  }
   0x2   :  { %v392_v2 = vcombine.high %v15_v0, %v15_v0  ;;  %v391_v3 = vcombine.low %v15_v0, %v15_v0  ;;  %v459_v4 = vld [vmem:[%s589_s0] sm:$0xff]   ;;  %v464_v9 = vld [vmem:[%s590_s1 + $0x8] sm:$0xff]   ;;  %v466_v11 = vld [vmem:[%s590_s1 + $0x10] sm:$0xff]   ;;  %v566_v42 = vshrl.u32 %v141_v41, 7  ;;  %vm367_vm4 = vcmask 254976  }
   0x3   :  { %v461_v5 = vld [vmem:[%s590_s1 + $0x40] sm:$0xff]   ;;  %v467_v12 = vld [vmem:[%s590_s1 + $0x58] sm:$0xff]   ;;  %v460_v13 = vld [vmem:[%s589_s0 + $0x8] ss:$0 sps:$4 sm:$0xff]   ;;  %vm383_vm5 = vcmask 1024  }
   0x4   :  { %393 = vmatprep.subr.msk.bf16.mxu0 %vm39_vm0, %v392_v2  ;;  %v41_v6 = vsel %vm39_vm0, %v391_v3, 0  ;;  %v462_v7 = vld [vmem:[%s590_s1] sm:$0xff]   ;;  %414 = vmatprep.subr.bf16.mxu1 %v461_v5  ;;  %v468_v14 = vld [vmem:[%s590_s1 + $0x18] sm:$0xff]   ;;  %v471_v17 = vld [vmem:[%s590_s1 + $0x68] sm:$0xff]   ;;  %v143_v45 = vsub.s32 0, %v566_v42 }
   0x5   :  { %47 = vmatpush1.bf16.msra.mxu0 %v41_v6  ;;  %415 = vmatpush3.bf16.msra.mxu1 %v462_v7  ;;  %v469_v15 = vld [vmem:[%s590_s1 + $0x60] sm:$0xff]   ;;  %v472_v18 = vld [vmem:[%s590_s1 + $0x28] sm:$0xff]   ;;  %v473_v19 = vld [vmem:[%s590_s1 + $0x70] sm:$0xff]  }
   0x6   :  { %416 = vmatprep.subr.bf16.mxu1 %v463_v8  ;;  %v470_v16 = vld [vmem:[%s590_s1 + $0x20] sm:$0xff]   ;;  %v474_v20 = vld [vmem:[%s590_s1 + $0x30] sm:$0xff]   ;;  %v475_v21 = vld [vmem:[%s590_s1 + $0x78] sm:$0xff]   ;;  %445 = vmatprep.subr.bf16.mxu0 %v482_v54 }
   0x7   :  { %v476_v22 = vld [vmem:[%s590_s1 + $0x38] sm:$0xff]   ;;  %v107_v43 = vld [vmem:[%s588_s2 + $0x8] sm:$0x1]  ;;  %v309_v7 = vld [vmem:[%s588_s2 + $0x30] sm:$0xf] }
   0x8   :  { %394 = vmatmul.mubr.msk.bf16.vlgmr.msra.gmra.mrb[0].mxu0 %vm32_vm1, %v459_v4  ;;  %v140_v44 = vunpack.c.l.bf16 %v107_v43 }
   0x9   :  { %88 = vmatprep.mubr.bf16.mxu0 %v481_v1  ;;  %417 = vmatpush3.bf16.msra.mxu1 %v464_v9  ;;  %v307_v1 = vld [vmem:[%s588_s2 + $0x20] ss:$8 sps:$4 sm:$0xff]  }
   0xa   :  { %418 = vmatprep.subr.bf16.mxu1 %v465_v10  ;;  %v144_v47 = vrot.slane %v140_v44, %v143_v45  ;;  %v311_v3 = vunpack.c.l.bf16 %v307_v1  ;;  %v312_v5 = vunpack.c.h.bf16 %v307_v1 }
   0xd   :  { %419 = vmatpush3.bf16.msra.mxu1 %v466_v11  ;;  %v313_v11 = vunpack.c.l.bf16 %v309_v7 }
   0xe   :  { %420 = vmatprep.subr.bf16.mxu1 %v467_v12 }
  0x10   :  { %395 = vmatmul.mubr.msk.bf16.gmra.mrb[4].mxu0 %vm32_vm1, %v460_v13 }
  0x11   :  { %421 = vmatpush3.bf16.msra.mxu1 %v468_v14  ;;  %449 = vmatprep.mubr.msk.bf16.mxu0 %vm484_vm2, %v482_v54 }
  0x12   :  { %422 = vmatprep.subr.bf16.mxu1 %v469_v15 }
  0x15   :  { %423 = vmatpush3.bf16.msra.mxu1 %v470_v16 }
  0x16   :  { %424 = vmatprep.subr.bf16.mxu1 %v471_v17 }
  0x19   :  { %425 = vmatpush3.bf16.msra.mxu1 %v472_v18  ;;  %v310_v18 = vld [vmem:[%s588_s2 + $0x18] sm:$0x1] }
  0x1a   :  { %426 = vmatprep.subr.bf16.mxu1 %v473_v19 }
  0x1d   :  { %427 = vmatpush3.bf16.msra.mxu1 %v474_v20 }
  0x1e   :  { %428 = vmatprep.subr.bf16.mxu1 %v475_v21 }
  0x21   :  { %429 = vmatpush3.bf16.msra.mxu1 %v476_v22 }
  0xdb   :  { %v80_v23 = vpop.f32.mrb[0].mxu0 }
  0xdc   :  { %v82_v24 = vpop.f32.mrb[1].mxu0  ;;  %v97_v26 = vmax.f32 %v80_v23, 0.0 }
  0xdd   :  { %v84_v25 = vpop.f32.mrb[2].mxu0  ;;  %v98_v29 = vmax.f32 %v82_v24, 0.0  ;;  %v366_v24 = vld [vmem:[%s588_s2 + $0x10] sm:$0x1] }
  0xde   :  { %v99_v27 = vmax.f32 %v84_v25, 0.0  ;;  %v86_v28 = vpop.f32.mrb[3].mxu0  ;;  %v371_v25 = vunpack.c.l.bf16 %v366_v24 }
  0xdf   :  { %v100_v30 = vmax.f32 %v86_v28, 0.0 }
  0xe0   :  { %v103_v31 = vpack.c.bf16 %v99_v27, %v97_v26  ;;  %v375_v26 = vrot.slane %v371_v25, %v143_v45 }
  0xe1   :  { %v104_v32 = vpack.c.bf16 %v100_v30, %v98_v29 }
  0xe3   :  { %273 = vmatprep.mubr.bf16.mxu1 %v104_v32  ;;  %v90_v33 = vpop.f32.mrb[4].mxu0 }
  0xe4   :  { %274 = vmatmul.mubr.bf16.vlgmr.msra.gmra.mrb[0].mxu1 %v103_v31  ;;  %v92_v34 = vpop.f32.mrb[5].mxu0  ;;  %v101_v37 = vmax.f32 %v90_v33, 0.0 }
  0xe5   :  { %v102_v35 = vmax.f32 %v92_v34, 0.0  ;;  %v94_v36 = vpop.f32.mrb[6].mxu0 }
  0xe6   :  { %v95_v38 = vpop.f32.mrb[7].mxu0  ;;  %v105_v40 = vpack.c.bf16 %v101_v37, %v101_v37 }
  0xe7   :  { %v106_v39 = vpack.c.bf16 %v102_v35, %v102_v35 }
  0xe9   :  { %281 = vmatprep.mubr.bf16.mxu1 %v106_v39 }
  0xec   :  { %282 = vmatmul.mubr.bf16.gmra.mrb[4].mxu1 %v105_v40 }
 0x1b7   :  { %v430_v46 = vpop.f32.mrb[0].mxu1 }
 0x1b8   :  { %v431_v48 = vpop.f32.mrb[1].mxu1 }
 0x1b9   :  { %v432_v49 = vadd.f32 %v431_v48, %v430_v46  ;;  %v433_v50 = vpop.f32.mrb[2].mxu1 }
 0x1ba   :  { %v434_v51 = vpop.f32.mrb[3].mxu1 }
 0x1bb   :  { %v435_v52 = vadd.f32 %v434_v51, %v433_v50  ;;  %v276_v53 = vadd.f32 %v432_v49, %v144_v47 }
 0x1bd   :  { %v279_v55 = vadd.f32 %v435_v52, %v144_v47  ;;  %v289_v56 = vmax.f32 %v276_v53, 0.0 }
 0x1bf   :  { %295 = vrot.lane.b32.xlu0 %v289_v56, %s483_s23  ;;  %v436_v57 = vpop.f32.mrb[4].mxu1  ;;  %v290_v59 = vmax.f32 %v279_v55, 0.0 }
 0x1c0   :  { %v437_v58 = vpop.f32.mrb[5].mxu1 }
 0x1c1   :  { %v438_v60 = vadd.f32 %v437_v58, %v436_v57  ;;  %v439_v61 = vpop.f32.mrb[6].mxu1 }
 0x1c2   :  { %v440_v62 = vpop.f32.mrb[7].mxu1 }
 0x1c3   :  { %297 = vrot.lane.b32.xlu0 %v290_v59, %s483_s23  ;;  %v284_v63 = vadd.f32 %v438_v60, %v144_v47 }
 0x1c5   :  { %v291_v0 = vmax.f32 %v284_v63, 0.0 }
 0x1c7   :  { %299 = vrot.lane.b32.xlu1 %v291_v0, %s483_s23 }
 0x231   :  { %v296_v2 = vpop.permute.xlu0 %295 }
 0x232   :  { %v304_v4 = vmax.f32 %v289_v56, %v296_v2 }
 0x234   :  { %v314_v9 = vmul.f32 %v311_v3, %v304_v4 }
 0x235   :  { %v298_v6 = vpop.permute.xlu0 %297 }
 0x236   :  { %v305_v8 = vmax.f32 %v290_v59, %v298_v6 }
 0x238   :  { %v315_v10 = vmul.f32 %v312_v5, %v305_v8 }
 0x239   :  { %v300_v12 = vpop.permute.xlu1 %299 }
 0x23a   :  { %v317_v13 = vpack.c.bf16 %v315_v10, %v314_v9  ;;  %v306_v14 = vmax.f32 %v291_v0, %v300_v12 }
 0x23c   :  { %v316_v15 = vmul.f32 %v313_v11, %v306_v14  ;;  %446 = vmatpush3.bf16.msra.mxu0 %v317_v13 }
 0x23d   :  { %447 = vmatprep.subr.bf16.mxu0 %v482_v54 }
 0x23e   :  { %v318_v16 = vpack.c.bf16 %v316_v15, %v316_v15 }
 0x240   :  { %v324_v17 = vsel %vm39_vm0, %v318_v16, 0 }
 0x241   :  { %448 = vmatpush3.bf16.msra.mxu0 %v324_v17 }
 0x244   :  { %450 = vmatmul.mubr.msk.bf16.vlgmr.msra.gmra.mrb[8].mxu0 %vm319_vm3, %v310_v18 }
 0x317   :  { %v360_v19 = vpop.f32.mrb[8].mxu0 }
 0x318   :  { %v451_v20 = vpop.f32.mrb[9].mxu0  ;;  %v368_v21 = vsel %vm367_vm4, %v360_v19, 0.0 }
 0x319   :  { %v363_v22 = vpop.f32.mrb[10].mxu0  ;;  %369 = vadd.xlane.f32.xlu1 %v368_v21 }
 0x31a   :  { %v452_v23 = vpop.f32.mrb[11].mxu0 }
 0x3a6   :  { %v370_v27 = vpop.xlane.xlu1 %369 }
 0x3a7   :  { %v376_v28 = vadd.f32 %v375_v26, %v370_v27 }
 0x3a9   :  { %v413_v29 = vmul.f32 -1.442695, %v376_v28 }
 0x3ab   :  { %477 = vpow2.f32 %v413_v29 }
 0x3b5   :  { %v478_v30 = vpop.eup %477 }
 0x3b6   :  { %v380_v31 = vadd.f32 1.0, %v478_v30 }
 0x3b8   :  { %479 = vrcp.f32 %v380_v31 }
 0x3c2   :  { %v480_v32 = vpop.eup %479 }
 0x3c3   :  { %384 = vst.msk [vmem:[%s591_s3] sm:$0x3] %vm383_vm5, %v480_v32 }

</bundles_post_ra>
